<compile_context>
chip_gen: v5e
topology: v5e:2x2
jax: 0.10.0
libtpu: 0.0.40
codegen_flags: <defaults>
</compile_context>

<pallas_src>
import functools

import jax
import jax.numpy as jnp
from jax.experimental import pallas as pl
from jax.experimental.pallas import tpu as pltpu

LANE = 128
SUBLANE = 8


def _vmem_capacity_bytes():
    try:
        return int(pltpu.get_tpu_info().vmem_capacity_bytes)
    except Exception:
        return 64 << 20  # conservative: v7x per-TensorCore VMEM


def _pool_kernel(x_ref, mean_ref, acc_ref, *, hw):
    """Per-(b*c)-row spatial mean, accumulated over the hw grid axis."""
    j = pl.program_id(1)

    @pl.when(j == 0)
    def _():
        acc_ref[...] = jnp.zeros_like(acc_ref)

    bc_t, thw = x_ref.shape
    acc_w = min(LANE, thw)

    t = x_ref[...].astype(jnp.float32)
    # Zero ragged tail lanes of the final spatial tile.  jnp.where (not a
    # multiply) also squashes any NaN/Inf garbage read from the OOB region of a
    # partial final block.
    col = jax.lax.broadcasted_iota(jnp.int32, (bc_t, thw), 1) + j * thw
    t = jnp.where(col < hw, t, 0.0)

    # Lane-group accumulation: vreg-aligned static slices + VPU adds only.  The
    # cross-lane (XLU) reduce is deferred to the single finalize step below so
    # the streaming loop stays HBM-bound instead of XLU-bound.
    partial = t[:, 0:acc_w]
    for g in range(1, thw // acc_w):
        partial = partial + t[:, g * acc_w:(g + 1) * acc_w]
    acc_ref[...] += partial

    @pl.when(j == pl.num_programs(1) - 1)
    def _():
        mean_ref[...] = (jnp.sum(acc_ref[...], axis=-1, keepdims=True)
                         * (1.0 / hw)).astype(mean_ref.dtype)


def _fc_sigmoid_kernel(mean_ref, w_ref, b_ref, attn_ref):
    """1x1 conv (== linear over channels) + numerically stable sigmoid."""
    z = jnp.dot(mean_ref[...], w_ref[...],
                preferred_element_type=jnp.float32) + b_ref[...]
    ez = jnp.exp(-jnp.abs(z))                       # never overflows
    sig = jnp.where(z >= 0, 1.0 / (1.0 + ez), ez / (1.0 + ez))
    attn_ref[...] = sig.astype(attn_ref.dtype)


def _scale_kernel(x_ref, attn_ref, o_ref):
    # [bc_t, thw] * [bc_t, 1] -> broadcast over the lane (spatial) dim.
    # Ragged tail lanes of the final block are clipped by the output-window DMA.
    o_ref[...] = x_ref[...] * attn_ref[...]


def channel_attention_forward(x, weight, bias, *, bc_tile=None, hw_tile=None):
    """x: [B, C, H, W] (NCHW). weight: [C, C, 1, 1]. bias: [C]. Returns NCHW."""
    B, C, H, W = x.shape
    assert weight.shape == (C, C, 1, 1)
    BC, HW = B * C, H * W
    dtype = x.dtype
    esz = jnp.dtype(dtype).itemsize

    # Free view: contiguous NCHW == [B*C, H*W].  No pad, no transpose.
    xf = x.reshape(BC, HW)

    # ---- VMEM-aware tile selection ------------------------------------------
    vmem_cap = _vmem_capacity_bytes()

    # bc tile: full extent when tiny, else a multiple of 8 giving >= 2 blocks so
    # the "parallel" bc axis can shard across v7x's two TensorCores.
    if BC <= SUBLANE:
        bc_t = BC
    else:
        bc_t = max(SUBLANE, min(1024, (pl.cdiv(BC, 2) // SUBLANE) * SUBLANE))
    if bc_tile is not None:
        bc_t = BC if bc_tile >= BC else max(SUBLANE, (bc_tile // SUBLANE) * SUBLANE)

    # hw tile: big lane-multiple within a per-buffer budget (>=512 lanes reaches
    # ~85% of HBM roofline; returns flatten past ~4096).  The scale kernel keeps
    # ~4 tile buffers live (double-buffered in + out), so budget well under the
    # per-core VMEM (64 MiB on v7x, 128 MiB on v5e/v6e).
    per_buf_budget = min(8 << 20, (vmem_cap // 2) // 4)
    if HW < LANE:
        thw = HW                                   # single full-extent block
    else:
        hw_floor = (HW // LANE) * LANE             # tiles never start past HW
        thw = per_buf_budget // max(1, bc_t * esz)
        thw = max(LANE, (thw // LANE) * LANE)
        thw = min(thw, 4096, hw_floor)
    if hw_tile is not None and HW >= LANE:
        thw = min(max(LANE, (hw_tile // LANE) * LANE), (HW // LANE) * LANE)

    n_bc = pl.cdiv(BC, bc_t)
    n_hw = pl.cdiv(HW, thw)
    acc_w = min(LANE, thw)

    tile_bytes = bc_t * thw * esz
    vmem_limit = int(min(vmem_cap * 3 // 4,
                         max(32 << 20, 4 * tile_bytes + (8 << 20))))

    # ---- Kernel 1: global average pool -> mean [B*C, 1] ----------------------
    mean = pl.pallas_call(
        functools.partial(_pool_kernel, hw=HW),
        out_shape=jax.ShapeDtypeStruct((BC, 1), jnp.float32),
        grid=(n_bc, n_hw),
        in_specs=[pl.BlockSpec((bc_t, thw), lambda i, j: (i, j))],
        out_specs=pl.BlockSpec((bc_t, 1), lambda i, j: (i, 0)),
        scratch_shapes=[pltpu.VMEM((bc_t, acc_w), jnp.float32)],
        compiler_params=pltpu.CompilerParams(
            dimension_semantics=("parallel", "arbitrary"),
            vmem_limit_bytes=vmem_limit),
        cost_estimate=pl.CostEstimate(
            flops=BC * HW, transcendentals=0,
            bytes_accessed=esz * BC * HW + 4 * BC),
    )(xf)

    # ---- Kernel 2: fc (1x1 conv) + sigmoid on the tiny pooled vector ---------
    w_t = weight.reshape(C, C).T.astype(jnp.float32)   # [C_in, C_out]
    b2 = bias.reshape(1, C).astype(jnp.float32)
    attn = pl.pallas_call(
        _fc_sigmoid_kernel,
        out_shape=jax.ShapeDtypeStruct((B, C), dtype),
        grid=(1,),
        in_specs=[pl.BlockSpec((B, C), lambda i: (0, 0)),
                  pl.BlockSpec((C, C), lambda i: (0, 0)),
                  pl.BlockSpec((1, C), lambda i: (0, 0))],
        out_specs=pl.BlockSpec((B, C), lambda i: (0, 0)),
        compiler_params=pltpu.CompilerParams(
            dimension_semantics=("arbitrary",),
            vmem_limit_bytes=vmem_limit),
        cost_estimate=pl.CostEstimate(
            flops=2 * B * C * C, transcendentals=B * C,
            bytes_accessed=4 * (B * C + C * C + C) + esz * B * C),
    )(mean.reshape(B, C), w_t, b2)

    # ---- Kernel 3: channel-wise scale, lane-dense, fully parallel ------------
    out2d = pl.pallas_call(
        _scale_kernel,
        out_shape=jax.ShapeDtypeStruct((BC, HW), dtype),
        grid=(n_bc, n_hw),
        in_specs=[pl.BlockSpec((bc_t, thw), lambda i, j: (i, j)),
                  pl.BlockSpec((bc_t, 1), lambda i, j: (i, 0))],
        out_specs=pl.BlockSpec((bc_t, thw), lambda i, j: (i, j)),
        compiler_params=pltpu.CompilerParams(
            dimension_semantics=("parallel", "parallel"),
            vmem_limit_bytes=vmem_limit),
        cost_estimate=pl.CostEstimate(
            flops=BC * HW, transcendentals=0,
            bytes_accessed=esz * (2 * BC * HW + BC)),
    )(xf, attn.reshape(BC, 1))

    return out2d.reshape(B, C, H, W)


def reference_forward(x, weight, bias):
    """Pure-JAX reference matching the PyTorch ChannelAttention forward."""
    B, C, H, W = x.shape
    mean = jnp.mean(x, axis=(2, 3))                    # AdaptiveAvgPool2d(1)
    logits = mean @ weight.reshape(C, C).T + bias      # 1x1 conv == linear
    attn = jax.nn.sigmoid(logits)
    return x * attn[:, :, None, None]


if __name__ == "__main__":
    key = jax.random.PRNGKey(0)
    k_x, k_w, k_b = jax.random.split(key, 3)

    # Primary small test (B, C, H, W) = (2, 4, 16, 16); hw_tile=128 forces a
    # 2-step spatial grid so the accumulate path is exercised.
    B, C, H, W = 2, 4, 16, 16
    x = jax.random.normal(k_x, (B, C, H, W), dtype=jnp.float32)
    weight = jax.random.normal(k_w, (C, C, 1, 1), dtype=jnp.float32) * 0.1
    bias = jax.random.normal(k_b, (C,), dtype=jnp.float32) * 0.1

    out = channel_attention_forward(x, weight, bias, hw_tile=128)
    out = jax.block_until_ready(out)
    ref = reference_forward(x, weight, bias)
    assert out.shape == (B, C, H, W)
    assert jnp.allclose(out, ref, atol=1e-5, rtol=1e-5)

    # Ragged test: HW=196 (not a multiple of 128) and B*C=15 (not a multiple of
    # 8) exercise the in-kernel tail masking and partial-block store clipping.
    B2, C2, H2, W2 = 3, 5, 14, 14
    k_x2, k_w2, k_b2 = jax.random.split(jax.random.PRNGKey(1), 3)
    x2 = jax.random.normal(k_x2, (B2, C2, H2, W2), dtype=jnp.float32)
    w2 = jax.random.normal(k_w2, (C2, C2, 1, 1), dtype=jnp.float32) * 0.1
    b2 = jax.random.normal(k_b2, (C2,), dtype=jnp.float32) * 0.1

    out2 = channel_attention_forward(x2, w2, b2, bc_tile=8, hw_tile=128)
    out2 = jax.block_until_ready(out2)
    ref2 = reference_forward(x2, w2, b2)
    assert out2.shape == (B2, C2, H2, W2)
    assert jnp.allclose(out2, ref2, atol=1e-5, rtol=1e-5)

    print("KERNEL_OK")
</pallas_src>

<mosaic_0001>
module attributes {stable_mosaic.version = 11 : i64} {
  func.func @_pool_kernel(%arg0: i32, %arg1: i32, %arg2: memref<8x128xf32, #tpu.memory_space<vmem>>, %arg3: memref<8x1xf32, #tpu.memory_space<vmem>>, %arg4: memref<8x128xf32, #tpu.memory_space<vmem>>) attributes {dimension_semantics = [#tpu.dimension_semantics<parallel>, #tpu.dimension_semantics<arbitrary>], iteration_bounds = array<i64: 1, 2>, scalar_prefetch = 0 : i64, scratch_operands = 1 : i64, tpu.core_type = #tpu.core_type<tc>, window_params = [{transform_indices = @transform_0, window_bounds = array<i64: 8, 128>}, {transform_indices = @transform_1, window_bounds = array<i64: 8, 1>}]} {
    %c0_i32 = arith.constant 0 : i32
    %0 = arith.cmpi eq, %arg1, %c0_i32 : i32
    %1 = arith.extui %0 : i1 to i32
    %c0_i32_0 = arith.constant 0 : i32
    %2 = arith.cmpi ne, %1, %c0_i32_0 : i32
    scf.if %2 {
      %cst_7 = arith.constant 0.000000e+00 : f32
      %18 = vector.broadcast %cst_7 : f32 to vector<8x128xf32>
      %c0_8 = arith.constant 0 : index
      %c0_9 = arith.constant 0 : index
      %19 = vector.load %arg4[%c0_8, %c0_9] : memref<8x128xf32, #tpu.memory_space<vmem>>, vector<8x128xf32>
      tpu.vector_store %arg4[%c0_8, %c0_9], %18 {strides = array<i32>} : memref<8x128xf32, #tpu.memory_space<vmem>>, vector<8x128xf32>,
    } else {
    }
    %c0 = arith.constant 0 : index
    %c0_1 = arith.constant 0 : index
    %3 = vector.load %arg2[%c0, %c0_1] : memref<8x128xf32, #tpu.memory_space<vmem>>, vector<8x128xf32>
    %4 = tpu.iota {dimensions = array<i32: 1>} : vector<8x128xi32>
    %c128_i32 = arith.constant 128 : i32
    %5 = arith.muli %arg1, %c128_i32 : i32
    %6 = vector.broadcast %5 : i32 to vector<8x128xi32>
    %7 = arith.addi %4, %6 : vector<8x128xi32>
    %c256_i32 = arith.constant 256 : i32
    %8 = vector.broadcast %c256_i32 : i32 to vector<8x128xi32>
    %9 = arith.cmpi slt, %7, %8 : vector<8x128xi32>
    %cst = arith.constant 0.000000e+00 : f32
    %10 = vector.broadcast %cst : f32 to vector<8x128xf32>
    %11 = arith.select %9, %3, %10 : vector<8x128xi1>, vector<8x128xf32>
    %c0_2 = arith.constant 0 : index
    %c0_3 = arith.constant 0 : index
    %12 = vector.load %arg4[%c0_2, %c0_3] : memref<8x128xf32, #tpu.memory_space<vmem>>, vector<8x128xf32>
    %13 = arith.addf %12, %11 : vector<8x128xf32>
    %c0_4 = arith.constant 0 : index
    %c0_5 = arith.constant 0 : index
    %14 = vector.load %arg4[%c0_4, %c0_5] : memref<8x128xf32, #tpu.memory_space<vmem>>, vector<8x128xf32>
    tpu.vector_store %arg4[%c0_4, %c0_5], %13 {strides = array<i32>} : memref<8x128xf32, #tpu.memory_space<vmem>>, vector<8x128xf32>,
    %c1_i32 = arith.constant 1 : i32
    %15 = arith.cmpi eq, %arg1, %c1_i32 : i32
    %16 = arith.extui %15 : i1 to i32
    %c0_i32_6 = arith.constant 0 : i32
    %17 = arith.cmpi ne, %16, %c0_i32_6 : i32
    scf.if %17 {
      %c0_7 = arith.constant 0 : index
      %c0_8 = arith.constant 0 : index
      %18 = vector.load %arg4[%c0_7, %c0_8] : memref<8x128xf32, #tpu.memory_space<vmem>>, vector<8x128xf32>
      %cst_9 = arith.constant dense<0.000000e+00> : vector<8xf32>
      %19 = vector.multi_reduction <add>, %18, %cst_9 [1] : vector<8x128xf32> to vector<8xf32>
      %20 = vector.shape_cast %19 : vector<8xf32> to vector<8x1xf32>
      %cst_10 = arith.constant 3.906250e-03 : f32
      %21 = vector.broadcast %cst_10 : f32 to vector<8x1xf32>
      %22 = arith.mulf %20, %21 : vector<8x1xf32>
      %c0_11 = arith.constant 0 : index
      %c0_12 = arith.constant 0 : index
      %23 = vector.load %arg3[%c0_11, %c0_12] : memref<8x1xf32, #tpu.memory_space<vmem>>, vector<8x1xf32>
      tpu.vector_store %arg3[%c0_11, %c0_12], %22 {strides = array<i32>} : memref<8x1xf32, #tpu.memory_space<vmem>>, vector<8x1xf32>,
    } else {
    }
    return
  }
  func.func @transform_0(%arg0: i32, %arg1: i32) -> (i32, i32) {
    %c0_i32 = arith.constant 0 : i32
    return %arg0, %arg1 : i32, i32
  }
  func.func @transform_1(%arg0: i32, %arg1: i32) -> (i32, i32) {
    %c0_i32 = arith.constant 0 : i32
    %c0_i32_0 = arith.constant 0 : i32
    return %arg0, %c0_i32 : i32, i32
  }
}

</mosaic_0001>

<bundles_post_ra>
// kernel: tpu_custom_call.1
= control target key start
LH: loop header
LB: loop body
LE: loop exit
PB: predicated region body
PF: predicated region fallthrough
CT: control target
= control target key end

     0   :  { %6 = vsyncpa [#allocation4], 0  ;;  %s499_s0 = inlined_call_operand.hbm [shape: f32[8,256], index: 0, kind: input, shape index: {}]   ;;  %s500_s1 = inlined_call_operand.vmem [shape: f32[8,1], index: 1, kind: output, shape index: {}]  }
   0x1   :  { %8 = vsyncpa [#allocation4 + $0x1], 0  ;;  %s410_s6 = smov 0   ;;  %s412_s7 = smov 0  }
   0x2   :  { %s414_s8 = smov 0   ;;  %s416_s9 = smov 0  }
   0x3   :  { %s418_s10 = smov 0   ;;  %s420_s11 = smov 0  }
   0x4 LB: > { %s248_s12 = sadd.s32 4294967295, %s397_s11   ;;  %s23_s13 = sadd.s32 1, %s393_s10  ;;  %s397_s11 = sphi %s420_s11, %s14_s11   ;;  %s393_s10 = sphi %s418_s10, %s507_s10   ;;  %s389_s9 = sphi %s416_s9, %s506_s9   ;;  %s385_s8 = sphi %s414_s8, %s505_s8   ;;  %s381_s7 = sphi %s412_s7, %s504_s7   ;;  %s377_s6 = sphi %s410_s6, %s503_s6  }
   0x5   : > { %p24_p0 = scmp.ge.s32.totalorder %s23_s13, 2  ;;  %s35_s14 = sadd.s32 1, %s385_s8 }
   0x6   : > { %p42_p1 = scmp.ne.s32.totalorder %s385_s8, %s381_s7  ;;  %p43_p2 = scmp.eq.s32.totalorder %s397_s11, 0 }
   0x7   : > { %s509_s13 = smov (%p24_p0, %s23_s13), 0  ;;  %p48_p4 = scmp.ne.s32.totalorder %s381_s7, %s377_s6 }
   0x8   : > { %p446_p3 = por %p43_p2, %p42_p1  ;;  %s31_s16 = ssub.s32 %s393_s10, %s509_s13 }
   0x9   : > { %p49_p5 = scmp.eq.s32.totalorder %s248_s12, 0  ;;  %p33_p6 = scmp.eq.s32.totalorder %s31_s16, 0 }
   0xa   : > { %p267_p8 = scmp.lt.s32.totalorder %s397_s11, 2  ;;  %s98_s19 = sand.u32 1, %s385_s8  }
   0xb   : > { %p453_p7 = por %p49_p5, %p48_p4  ;;  %s252_s20 = sshll.u32 %s393_s10, 3 }
   0xc   : > { %s459_s18 = scalar_select %p33_p6, %s385_s8, %s35_s14  }
   0xd   : > { %s251_s21 = sshll.u32 %s98_s19, 3  ;;  %s108_s24 = scalar_lea.hbm %s499_s0, %s252_s20 }
   0xe   : > { %s110_s25 = sshll.u32 %s108_s24, 4  ;;  %s102_s26 = scalar_lea.vmem [#allocation3], %s251_s21  ;;  %s111_s25 = int_to_ptr.hbm [resolvable:$true] %s110_s25 }
   0xf   : > { %s112_s27 = sshll.u32 %s102_s26, 4  ;;  %p264_p9 = pnand %p267_p8, %p446_p3  ;;  %s113_s27 = int_to_ptr.vmem [resolvable:$true] %s112_s27 }
  0x10   : > { %p253_p10 = scmp.ge.s32.totalorder %s397_s11, 1  ;;  %p117_p11 = scmp.lt.s32.totalorder %s397_s11, 3 }
  0x11   : > { %s99_s28 = scalar_lea.sflag [#allocation4], %s98_s19 }
  0x12   : > { %266 = dma.hbm_to_vmem [thread:$0]  (!%p264_p9), %s111_s25, 128, %s113_s27, %s99_s28  }
  0x13   : > { %p118_p12 = pnand %p253_p10, %p117_p11 }
  0x14   : > { %s123_s29 = sand.u32 (!%p118_p12), 1, %s381_s7  }
  0x15   : > { %121 = sbr.rel (%p118_p12) target bundleno = 173 (0xad), region = 24  ;;  %s254_s30 = sshll.u32 (!%p118_p12), %s123_s29, 3 }
  0x16   : > { %s124_s2 = scalar_lea.sflag (!%p118_p12), [#allocation4], %s123_s29  ;;  %s127_s3 = scalar_lea.vmem (!%p118_p12), [#allocation3], %s254_s30 }
  0x1a   : > { %372 = dma.done.wait (%p453_p7), %s124_s2, 128  }
  0x1b   : > { %374 = vsyncadd (%p453_p7), %s124_s2, 4294967168  ;;  %p255_p13 = scmp.ne.s32.totalorder %s389_s9, 0 }
  0x1d   : > { %153 = sbr.rel (%p255_p13) target bundleno = 36 (0x24), region = 32 }
  0x22   : > { %v399_v0 = vmov 0.0  }
  0x23   : > { %154 = vst [vmem:[#allocation2] sm:$0xff] %v399_v0 }
  0x24 PF: > { %v156_v1 = vlaneseq  ;;  %s256_s4 = sshll.u32 %s389_s9, 7  ;;  %v155_v4 = vld [vmem:[%s127_s3] sm:$0xff]  ;;  %p257_p0 = scmp.ne.s32.totalorder %s389_s9, 1 }
  0x25   : > { %v159_v2 = vstv %s256_s4 }
  0x26   : > { %v157_v3 = vand.u32 127, %v156_v1 }
  0x28   : > { %v160_v5 = vadd.s32 %v159_v2, %v157_v3 }
  0x2a   : > { %v163_v6 = vld [vmem:[#allocation2] sm:$0xff]  ;;  %vm161_vm0 = vcmp.lt.s32.totalorder %v160_v5, 256  ;;  %169 = sbr.rel (%p257_p0) target bundleno = 173 (0xad), region = 36 }
  0x2b   : > { %v162_v7 = vsel %vm161_vm0, %v155_v4, 0.0 }
  0x2c   : > { %v164_v8 = vadd.f32 %v163_v6, %v162_v7 }
  0x2e   : > { %165 = vst [vmem:[#allocation2] sm:$0xff] %v164_v8 }
  0x2f   : > { %vm174_vm1 = vcmask 7168  }
  0x35   : > { %v170_v9 = vld [vmem:[#allocation2] sm:$0xff] }
  0x36   : > { %171 = vadd.xlane.f32.xlu0 %v170_v9 }
  0xa9   : > { %v172_v10 = vpop.xlane.xlu0 %171 }
  0xaa   : > { %v173_v11 = vmul.f32 0.00390625, %v172_v10 }
  0xac   : > { %175 = vst.msk [vmem:[%s500_s1] sm:$0xff] %vm174_vm1, %v173_v11 }
  0xad PF: > { %s14_s11 = sadd.s32 1, %s397_s11   ;;  %s503_s6 = smov %s381_s7 }
  0xae   : > { %p11_p1 = scmp.ge.s32.totalorder %s14_s11, 4   ;;  %s504_s7 = smov %s385_s8 }
  0xaf   : > { %s505_s8 = smov %s459_s18  ;;  %s506_s9 = smov %s393_s10 }
  0xb0   : > { %s507_s10 = smov %s509_s13  ;;  %13 = sbr.rel (!%p11_p1) target bundleno = 4 (0x4), region = 72 }
  0xb5   :  { %195 = vsyncpa [#allocation4], 1 }
  0xb6   :  { %197 = vsyncpa [#allocation4 + $0x1], 1 }

</bundles_post_ra>
